<compile_context>
chip_gen: v6e
topology: v6e:2x2x1
jax: 0.10.0
libtpu: 0.0.40
codegen_flags: <defaults>
</compile_context>

<pallas_src>
import jax
import jax.numpy as jnp
from jax import lax
from jax.experimental import pallas as pl
from jax.experimental.pallas import tpu as pltpu


def gin_kernel(eps_ref, a_ref, w1_ref, w2_ref, p_ref, x_hbm_ref, o_ref,
               dis_ref):
    i = pl.program_id(0)
    B, N, _ = a_ref.shape
    M, Dp = o_ref.shape
    inv_m = 1.0 / M

    @pl.when(i == 0)
    def _():
        # Load X once into the resident carry (no pipelined X input block).
        pltpu.sync_copy(x_hbm_ref, o_ref)
        # d_inv_sqrt from the raw 0/1 adjacency; accumulate in f32 (exact).
        deg = jnp.sum(a_ref[...].astype(jnp.float32), axis=-1, keepdims=True)
        dis_ref[...] = lax.rsqrt(jnp.maximum(deg, 1.0))       # (B, N, 1)

    h = o_ref[...]                                            # (M, Dp) f32
    eps_i = eps_ref[i]                                        # scalar (SMEM)

    # Aggregation: D^{-1/2} A D^{-1/2} h == dis * (A @ (dis * h)).
    # bf16 operands, f32 accumulation on the MXU.
    dis = dis_ref[...]                                        # (B, N, 1)
    h3 = h.reshape(B, N, Dp)
    agg = jnp.einsum('bnm,bmd->bnd', a_ref[...],
                     (h3 * dis).astype(jnp.bfloat16),
                     preferred_element_type=jnp.float32)
    agg = (agg * dis).reshape(M, Dp)
    z = (1.0 + eps_i) * h + agg                               # f32 elementwise

    # Packed per-layer vectors: rows = [b1, b2, gamma, beta], each (1, Dp).
    b1 = p_ref[0:1, :]
    b2 = p_ref[1:2, :]
    gamma = p_ref[2:3, :]
    beta = p_ref[3:4, :]

    # MLP: Linear -> ReLU -> Linear (bf16 operands, f32 accumulation),
    # flattened over batch * nodes.
    y = jnp.dot(z.astype(jnp.bfloat16), w1_ref[...],
                preferred_element_type=jnp.float32) + b1
    y = jnp.maximum(y, 0.0)
    y = jnp.dot(y.astype(jnp.bfloat16), w2_ref[...],
                preferred_element_type=jnp.float32) + b2

    # BatchNorm1d (training mode): per-feature stats over batch*nodes,
    # two-pass (centered, biased) variance + fused scale/shift epilogue.
    mean = jnp.sum(y, axis=0, keepdims=True) * inv_m          # (1, Dp)
    d = y - mean
    var = jnp.sum(d * d, axis=0, keepdims=True) * inv_m
    scale = gamma * lax.rsqrt(var + 1e-5)
    o_ref[...] = d * scale + beta


def _round_up(x, m):
    return (x + m - 1) // m * m


def _vmem_limit_bytes():
    # Generation-aware scoped-VMEM limit: ~3/4 of physical capacity
    # (128 MiB on v5e/v6e -> 96 MiB, 64 MiB on v7x -> 48 MiB).
    try:
        cap = pltpu.get_tpu_info().vmem_capacity_bytes
    except Exception:
        cap = 64 * 1024 * 1024
    return int(cap) * 3 // 4


@jax.jit
def gin_forward(X, A, eps, w1, b1, w2, b2, gamma, beta):
    B, N, D = X.shape
    k = eps.shape[0]
    # Lane-dense feature dim; align to 256 only when D > 128 so the v6e/v7x
    # 256x256 MXU passes are filled (128 already matches the v5e MXU).
    lane = 128 if D <= 128 else 256
    Dp = _round_up(D, lane)
    pad = Dp - D
    M = B * N

    # Zero-padded feature lanes stay exactly zero through every layer (zero
    # weight rows/cols, zero biases/beta) and are sliced off at the end.
    Xp = jnp.pad(X, ((0, 0), (0, 0), (0, pad))).reshape(M, Dp)
    A_bf16 = A.astype(jnp.bfloat16)          # exact for 0/1 adjacency
    w1p = jnp.pad(w1, ((0, 0), (0, pad), (0, pad))).astype(jnp.bfloat16)
    w2p = jnp.pad(w2, ((0, 0), (0, pad), (0, pad))).astype(jnp.bfloat16)
    params = jnp.stack([
        jnp.pad(b1, ((0, 0), (0, pad))),
        jnp.pad(b2, ((0, 0), (0, pad))),
        jnp.pad(gamma, ((0, 0), (0, pad)), constant_values=1.0),
        jnp.pad(beta, ((0, 0), (0, pad))),
    ], axis=1)                               # (k, 4, Dp) f32

    out = pl.pallas_call(
        gin_kernel,
        out_shape=jax.ShapeDtypeStruct((M, Dp), jnp.float32),
        grid_spec=pltpu.PrefetchScalarGridSpec(
            num_scalar_prefetch=0,
            grid=(k,),
            in_specs=[
                pl.BlockSpec(memory_space=pltpu.MemorySpace.SMEM),  # eps (k,)
                pl.BlockSpec((B, N, N), lambda i: (0, 0, 0)),       # A bf16
                pl.BlockSpec((None, Dp, Dp), lambda i: (i, 0, 0)),  # w1[i]
                pl.BlockSpec((None, Dp, Dp), lambda i: (i, 0, 0)),  # w2[i]
                pl.BlockSpec((None, 4, Dp), lambda i: (i, 0, 0)),   # b/g/beta
                pl.BlockSpec(memory_space=pl.ANY),                  # X in HBM
            ],
            out_specs=pl.BlockSpec((M, Dp), lambda i: (0, 0)),      # carry
            scratch_shapes=[pltpu.VMEM((B, N, 1), jnp.float32)],    # d^-1/2
        ),
        compiler_params=pltpu.CompilerParams(
            dimension_semantics=("arbitrary",),
            vmem_limit_bytes=_vmem_limit_bytes()),
    )(eps, A_bf16, w1p, w2p, params, Xp)

    return out.reshape(B, N, Dp)[:, :, :D]


def gin_reference(X, A, eps, w1, b1, w2, b2, gamma, beta):
    """Pure-JAX f32 reference matching the PyTorch module (training mode)."""
    dis = lax.rsqrt(jnp.maximum(jnp.sum(A, axis=-1), 1.0))
    An = dis[:, :, None] * A * dis[:, None, :]
    h = X
    for i in range(eps.shape[0]):
        z = (1.0 + eps[i]) * h + jnp.einsum('bnm,bmd->bnd', An, h)
        y = jnp.maximum(z @ w1[i] + b1[i], 0.0) @ w2[i] + b2[i]
        mean = jnp.mean(y, axis=(0, 1), keepdims=True)
        var = jnp.mean((y - mean) ** 2, axis=(0, 1), keepdims=True)
        h = (y - mean) / jnp.sqrt(var + 1e-5) * gamma[i] + beta[i]
    return h


def init_params(key, k, d_in, d_out):
    # The module maps input_dimension -> output_dimension in every layer, so
    # d_in == d_out is required for k > 1.
    assert d_in == d_out
    keys = jax.random.split(key, 4)
    s1 = 1.0 / jnp.sqrt(jnp.float32(d_in))
    s2 = 1.0 / jnp.sqrt(jnp.float32(d_out))
    w1 = jax.random.normal(keys[0], (k, d_in, d_out), jnp.float32) * s1
    b1 = jax.random.normal(keys[1], (k, d_out), jnp.float32) * 0.01
    w2 = jax.random.normal(keys[2], (k, d_out, d_out), jnp.float32) * s2
    b2 = jax.random.normal(keys[3], (k, d_out), jnp.float32) * 0.01
    eps = jnp.zeros((k,), jnp.float32)            # nn.Parameter(torch.zeros(k))
    gamma = jnp.ones((k, d_out), jnp.float32)     # BatchNorm1d weight init
    beta = jnp.zeros((k, d_out), jnp.float32)     # BatchNorm1d bias init
    return eps, w1, b1, w2, b2, gamma, beta


if __name__ == "__main__":
    B, N, D, K = 2, 16, 32, 3
    key = jax.random.PRNGKey(0)
    kx, ka, kp = jax.random.split(key, 3)

    X = jax.random.normal(kx, (B, N, D), jnp.float32)
    # Random symmetric 0/1 adjacency.
    A_raw = jax.random.uniform(ka, (B, N, N), jnp.float32)
    A = (((A_raw + jnp.swapaxes(A_raw, -1, -2)) * 0.5) > 0.5).astype(jnp.float32)

    eps, w1, b1, w2, b2, gamma, beta = init_params(kp, K, D, D)

    out = gin_forward(X, A, eps, w1, b1, w2, b2, gamma, beta)
    out = jax.block_until_ready(out)
    assert out.shape == (B, N, D)
    assert bool(jnp.all(jnp.isfinite(out)))

    # Loose tolerance: aggregation/MLP matmuls use bf16 operands (f32 accum).
    ref = gin_reference(X, A, eps, w1, b1, w2, b2, gamma, beta)
    max_err = float(jnp.max(jnp.abs(out - ref)))
    assert max_err < 0.25, f"max abs err vs reference: {max_err}"
    print("KERNEL_OK")
</pallas_src>

<mosaic_0001>
module attributes {stable_mosaic.version = 11 : i64} {
  func.func @gin_kernel(%arg0: i32, %arg1: memref<3xf32, #tpu.memory_space<smem>>, %arg2: memref<2x16x16xbf16, #tpu.memory_space<vmem>>, %arg3: memref<1x128x128xbf16, #tpu.memory_space<vmem>>, %arg4: memref<1x128x128xbf16, #tpu.memory_space<vmem>>, %arg5: memref<1x4x128xf32, #tpu.memory_space<vmem>>, %arg6: memref<32x128xf32, #tpu.memory_space<any>>, %arg7: memref<32x128xf32, #tpu.memory_space<vmem>>, %arg8: memref<2x16x1xf32, #tpu.memory_space<vmem>>) attributes {dimension_semantics = [#tpu.dimension_semantics<arbitrary>], iteration_bounds = array<i64: 3>, scalar_prefetch = 0 : i64, scratch_operands = 1 : i64, tpu.core_type = #tpu.core_type<tc>, window_params = [{transform_indices = @transform_0, window_bounds = array<i64: 3>}, {pipeline_mode = #tpu.pipeline_mode<synchronous>, transform_indices = @transform_1, window_bounds = array<i64: 2, 16, 16>}, {transform_indices = @transform_2, window_bounds = array<i64: 1, 128, 128>}, {transform_indices = @transform_3, window_bounds = array<i64: 1, 128, 128>}, {transform_indices = @transform_4, window_bounds = array<i64: 1, 4, 128>}, {}, {pipeline_mode = #tpu.pipeline_mode<synchronous>, transform_indices = @transform_6, window_bounds = array<i64: 32, 128>}]} {
    %c0_i32 = arith.constant 0 : i32
    %0 = arith.cmpi eq, %arg0, %c0_i32 : i32
    %1 = arith.extui %0 : i1 to i32
    %c0_i32_0 = arith.constant 0 : i32
    %2 = arith.cmpi ne, %1, %c0_i32_0 : i32
    scf.if %2 {
      "tpu.region"() ({
        %70 = tpu.sem_alloc : memref<!tpu.dma_semaphore, #tpu.memory_space<semaphore_mem>>
        tpu.enqueue_dma source(%arg6 : memref<32x128xf32, #tpu.memory_space<any>>) target(%arg7 : memref<32x128xf32, #tpu.memory_space<vmem>>) target_semaphore(%70 : memref<!tpu.dma_semaphore, #tpu.memory_space<semaphore_mem>>)
        tpu.wait_dma2 semaphore(%70 : memref<!tpu.dma_semaphore, #tpu.memory_space<semaphore_mem>>) src(%arg6 : memref<32x128xf32, #tpu.memory_space<any>>) dst(%arg7 : memref<32x128xf32, #tpu.memory_space<vmem>>)
        tpu.yield
      }) : () -> ()
      %c0_34 = arith.constant 0 : index
      %c0_35 = arith.constant 0 : index
      %c0_36 = arith.constant 0 : index
      %62 = vector.load %arg2[%c0_34, %c0_35, %c0_36] : memref<2x16x16xbf16, #tpu.memory_space<vmem>>, vector<2x16x16xbf16>
      %63 = arith.extf %62 : vector<2x16x16xbf16> to vector<2x16x16xf32>
      %cst_37 = arith.constant dense<0.000000e+00> : vector<2x16xf32>
      %64 = vector.multi_reduction <add>, %63, %cst_37 [2] : vector<2x16x16xf32> to vector<2x16xf32>
      %65 = vector.shape_cast %64 : vector<2x16xf32> to vector<2x16x1xf32>
      %cst_38 = arith.constant 1.000000e+00 : f32
      %66 = vector.broadcast %cst_38 : f32 to vector<2x16x1xf32>
      %67 = arith.maximumf %65, %66 : vector<2x16x1xf32>
      %68 = math.rsqrt %67 : vector<2x16x1xf32>
      %c0_39 = arith.constant 0 : index
      %c0_40 = arith.constant 0 : index
      %c0_41 = arith.constant 0 : index
      %69 = vector.load %arg8[%c0_39, %c0_40, %c0_41] : memref<2x16x1xf32, #tpu.memory_space<vmem>>, vector<2x16x1xf32>
      tpu.vector_store %arg8[%c0_39, %c0_40, %c0_41], %68 {strides = array<i32>} : memref<2x16x1xf32, #tpu.memory_space<vmem>>, vector<2x16x1xf32>,
    } else {
    }
    %c0 = arith.constant 0 : index
    %c0_1 = arith.constant 0 : index
    %3 = vector.load %arg7[%c0, %c0_1] : memref<32x128xf32, #tpu.memory_space<vmem>>, vector<32x128xf32>
    %4 = arith.index_cast %arg0 : i32 to index
    %5 = memref.load %arg1[%4] : memref<3xf32, #tpu.memory_space<smem>>
    %c0_2 = arith.constant 0 : index
    %c0_3 = arith.constant 0 : index
    %c0_4 = arith.constant 0 : index
    %6 = vector.load %arg8[%c0_2, %c0_3, %c0_4] : memref<2x16x1xf32, #tpu.memory_space<vmem>>, vector<2x16x1xf32>
    %7 = vector.shape_cast %3 : vector<32x128xf32> to vector<2x16x128xf32>
    %c0_5 = arith.constant 0 : index
    %c0_6 = arith.constant 0 : index
    %c0_7 = arith.constant 0 : index
    %8 = vector.load %arg2[%c0_5, %c0_6, %c0_7] : memref<2x16x16xbf16, #tpu.memory_space<vmem>>, vector<2x16x16xbf16>
    %9 = vector.broadcast %6 : vector<2x16x1xf32> to vector<2x16x128xf32>
    %10 = arith.mulf %7, %9 : vector<2x16x128xf32>
    %11 = arith.truncf %10 : vector<2x16x128xf32> to vector<2x16x128xbf16>
    "tpu.trace_start"() <{level = 10 : i32, message = "bnm,bmd->bnd"}> : () -> ()
    %cst = arith.constant dense<0.000000e+00> : vector<2x16x128xf32>
    %12 = tpu.matmul %8, %11, %cst {dimension_numbers = #tpu.dot_dimension_numbers<[2], [1], [1], [2], [0, 0, 0, 1, 1, 2], [0], [0]>} : vector<2x16x16xbf16>, vector<2x16x128xbf16>, vector<2x16x128xf32> -> vector<2x16x128xf32>
    "tpu.trace_stop"() : () -> ()
    %13 = vector.broadcast %6 : vector<2x16x1xf32> to vector<2x16x128xf32>
    %14 = arith.mulf %12, %13 : vector<2x16x128xf32>
    %15 = vector.shape_cast %14 : vector<2x16x128xf32> to vector<32x128xf32>
    %cst_8 = arith.constant 1.000000e+00 : f32
    %16 = arith.addf %cst_8, %5 : f32
    %17 = vector.broadcast %16 : f32 to vector<32x128xf32>
    %18 = arith.mulf %17, %3 : vector<32x128xf32>
    %19 = arith.addf %18, %15 : vector<32x128xf32>
    %c0_9 = arith.constant 0 : index
    %c0_10 = arith.constant 0 : index
    %c0_11 = arith.constant 0 : index
    %20 = vector.load %arg5[%c0_9, %c0_10, %c0_11] : memref<1x4x128xf32, #tpu.memory_space<vmem>>, vector<1x1x128xf32>
    %21 = vector.shape_cast %20 : vector<1x1x128xf32> to vector<1x128xf32>
    %c0_12 = arith.constant 0 : index
    %c1 = arith.constant 1 : index
    %c0_13 = arith.constant 0 : index
    %22 = vector.load %arg5[%c0_12, %c1, %c0_13] : memref<1x4x128xf32, #tpu.memory_space<vmem>>, vector<1x1x128xf32>
    %23 = vector.shape_cast %22 : vector<1x1x128xf32> to vector<1x128xf32>
    %c0_14 = arith.constant 0 : index
    %c2 = arith.constant 2 : index
    %c0_15 = arith.constant 0 : index
    %24 = vector.load %arg5[%c0_14, %c2, %c0_15] : memref<1x4x128xf32, #tpu.memory_space<vmem>>, vector<1x1x128xf32>
    %25 = vector.shape_cast %24 : vector<1x1x128xf32> to vector<1x128xf32>
    %c0_16 = arith.constant 0 : index
    %c3 = arith.constant 3 : index
    %c0_17 = arith.constant 0 : index
    %26 = vector.load %arg5[%c0_16, %c3, %c0_17] : memref<1x4x128xf32, #tpu.memory_space<vmem>>, vector<1x1x128xf32>
    %27 = vector.shape_cast %26 : vector<1x1x128xf32> to vector<1x128xf32>
    %28 = arith.truncf %19 : vector<32x128xf32> to vector<32x128xbf16>
    %c0_18 = arith.constant 0 : index
    %c0_19 = arith.constant 0 : index
    %c0_20 = arith.constant 0 : index
    %29 = vector.load %arg3[%c0_18, %c0_19, %c0_20] : memref<1x128x128xbf16, #tpu.memory_space<vmem>>, vector<1x128x128xbf16>
    %30 = vector.shape_cast %29 : vector<1x128x128xbf16> to vector<128x128xbf16>
    %cst_21 = arith.constant dense<0.000000e+00> : vector<32x128xf32>
    %31 = tpu.matmul %28, %30, %cst_21 {dimension_numbers = #tpu.dot_dimension_numbers<[1], [0], [0], [1], [0, 0, 1, 1], [], []>} : vector<32x128xbf16>, vector<128x128xbf16>, vector<32x128xf32> -> vector<32x128xf32>
    %32 = vector.broadcast %21 : vector<1x128xf32> to vector<32x128xf32>
    %33 = arith.addf %31, %32 : vector<32x128xf32>
    %cst_22 = arith.constant 0.000000e+00 : f32
    %34 = vector.broadcast %cst_22 : f32 to vector<32x128xf32>
    %35 = arith.maximumf %33, %34 : vector<32x128xf32>
    %36 = arith.truncf %35 : vector<32x128xf32> to vector<32x128xbf16>
    %c0_23 = arith.constant 0 : index
    %c0_24 = arith.constant 0 : index
    %c0_25 = arith.constant 0 : index
    %37 = vector.load %arg4[%c0_23, %c0_24, %c0_25] : memref<1x128x128xbf16, #tpu.memory_space<vmem>>, vector<1x128x128xbf16>
    %38 = vector.shape_cast %37 : vector<1x128x128xbf16> to vector<128x128xbf16>
    %cst_26 = arith.constant dense<0.000000e+00> : vector<32x128xf32>
    %39 = tpu.matmul %36, %38, %cst_26 {dimension_numbers = #tpu.dot_dimension_numbers<[1], [0], [0], [1], [0, 0, 1, 1], [], []>} : vector<32x128xbf16>, vector<128x128xbf16>, vector<32x128xf32> -> vector<32x128xf32>
    %40 = vector.broadcast %23 : vector<1x128xf32> to vector<32x128xf32>
    %41 = arith.addf %39, %40 : vector<32x128xf32>
    %cst_27 = arith.constant dense<0.000000e+00> : vector<128xf32>
    %42 = vector.multi_reduction <add>, %41, %cst_27 [0] : vector<32x128xf32> to vector<128xf32>
    %43 = vector.shape_cast %42 : vector<128xf32> to vector<1x128xf32>
    %cst_28 = arith.constant 3.125000e-02 : f32
    %44 = vector.broadcast %cst_28 : f32 to vector<1x128xf32>
    %45 = arith.mulf %43, %44 : vector<1x128xf32>
    %46 = vector.broadcast %45 : vector<1x128xf32> to vector<32x128xf32>
    %47 = arith.subf %41, %46 : vector<32x128xf32>
    %48 = arith.mulf %47, %47 : vector<32x128xf32>
    %cst_29 = arith.constant dense<0.000000e+00> : vector<128xf32>
    %49 = vector.multi_reduction <add>, %48, %cst_29 [0] : vector<32x128xf32> to vector<128xf32>
    %50 = vector.shape_cast %49 : vector<128xf32> to vector<1x128xf32>
    %cst_30 = arith.constant 3.125000e-02 : f32
    %51 = vector.broadcast %cst_30 : f32 to vector<1x128xf32>
    %52 = arith.mulf %50, %51 : vector<1x128xf32>
    %cst_31 = arith.constant 9.99999974E-6 : f32
    %53 = vector.broadcast %cst_31 : f32 to vector<1x128xf32>
    %54 = arith.addf %52, %53 : vector<1x128xf32>
    %55 = math.rsqrt %54 : vector<1x128xf32>
    %56 = arith.mulf %25, %55 : vector<1x128xf32>
    %57 = vector.broadcast %56 : vector<1x128xf32> to vector<32x128xf32>
    %58 = arith.mulf %47, %57 : vector<32x128xf32>
    %59 = vector.broadcast %27 : vector<1x128xf32> to vector<32x128xf32>
    %60 = arith.addf %58, %59 : vector<32x128xf32>
    %c0_32 = arith.constant 0 : index
    %c0_33 = arith.constant 0 : index
    %61 = vector.load %arg7[%c0_32, %c0_33] : memref<32x128xf32, #tpu.memory_space<vmem>>, vector<32x128xf32>
    tpu.vector_store %arg7[%c0_32, %c0_33], %60 {strides = array<i32>} : memref<32x128xf32, #tpu.memory_space<vmem>>, vector<32x128xf32>,
    return
  }
  func.func @transform_0(%arg0: i32) -> i32 {
    %c0_i32 = arith.constant 0 : i32
    %c0_i32_0 = arith.constant 0 : i32
    return %c0_i32 : i32
  }
  func.func @transform_1(%arg0: i32) -> (i32, i32, i32) {
    %c0_i32 = arith.constant 0 : i32
    %c0_i32_0 = arith.constant 0 : i32
    %c0_i32_1 = arith.constant 0 : i32
    %c0_i32_2 = arith.constant 0 : i32
    return %c0_i32, %c0_i32_0, %c0_i32_1 : i32, i32, i32
  }
  func.func @transform_2(%arg0: i32) -> (i32, i32, i32) {
    %c0_i32 = arith.constant 0 : i32
    %c0_i32_0 = arith.constant 0 : i32
    %c0_i32_1 = arith.constant 0 : i32
    return %arg0, %c0_i32, %c0_i32_0 : i32, i32, i32
  }
  func.func @transform_3(%arg0: i32) -> (i32, i32, i32) {
    %c0_i32 = arith.constant 0 : i32
    %c0_i32_0 = arith.constant 0 : i32
    %c0_i32_1 = arith.constant 0 : i32
    return %arg0, %c0_i32, %c0_i32_0 : i32, i32, i32
  }
  func.func @transform_4(%arg0: i32) -> (i32, i32, i32) {
    %c0_i32 = arith.constant 0 : i32
    %c0_i32_0 = arith.constant 0 : i32
    %c0_i32_1 = arith.constant 0 : i32
    return %arg0, %c0_i32, %c0_i32_0 : i32, i32, i32
  }
  func.func @transform_6(%arg0: i32) -> (i32, i32) {
    %c0_i32 = arith.constant 0 : i32
    %c0_i32_0 = arith.constant 0 : i32
    %c0_i32_1 = arith.constant 0 : i32
    return %c0_i32, %c0_i32_0 : i32, i32
  }
}

</mosaic_0001>

<bundles_post_ra>
// kernel: gin_forward.1
= control target key start
LH: loop header
LB: loop body
LE: loop exit
PB: predicated region body
PF: predicated region fallthrough
CT: control target
= control target key end

     0   :  { %11 = vsyncpa [#allocation5], 0  ;;  %s1317_s0 = inlined_call_operand.vmem [shape: f32[3], index: 0, kind: input, shape index: {}]   ;;  %s1318_s1 = inlined_call_operand.vmem [shape: bf16[2,16,16], index: 1, kind: input, shape index: {}]   ;;  %s1319_s2 = inlined_call_operand.vmem [shape: bf16[3,128,128], index: 2, kind: input, shape index: {}]   ;;  %s1320_s3 = inlined_call_operand.vmem [shape: bf16[3,128,128], index: 3, kind: input, shape index: {}]   ;;  %s1321_s4 = inlined_call_operand.vmem [shape: f32[3,4,128], index: 4, kind: input, shape index: {}]   ;;  %s1322_s5 = inlined_call_operand.vmem [shape: f32[32,128], index: 5, kind: input, shape index: {}]   ;;  %s1323_s6 = inlined_call_operand.hbm [shape: f32[32,128], index: 6, kind: output, shape index: {}]  }
   0x1   :  { %12 = vsyncpa [#allocation4], 0  ;;  %s1181_s21 = smov 0  }
   0x2 LB: > { %s1187_s22 = sadd.s32 4294967295, %s1137_s21   ;;  %p896_p0 = scmp.ge.s32.totalorder %s1137_s21, 1  ;;  %s1137_s21 = sphi %s1181_s21, %s18_s21  }
   0x3   : > { %p164_p1 = scmp.lt.s32.totalorder %s1137_s21, 4  ;;  %s177_s25 = sshll.u32 %s1317_s0, 4  ;;  %s178_s25 = int_to_ptr.vmem [resolvable:$true] %s177_s25 }
   0x4   : > { %p1033_p4 = scmp.eq.s32.totalorder %s1187_s22, 0  ;;  %s1082_s27 = scalar_lea.vmem %s178_s25, 16 }
   0x5   : > { %p1195_p3 = pnand %p896_p0, %p164_p1  ;;  %p1083_p7 = scmp.ne.s32.totalorder %s178_s25, %s1082_s27 }
   0x6   : > { %p1090_p11 = scmp.lt.s32.totalorder %s178_s25, %s178_s25  ;;  %p1091_p12 = scmp.lt.s32.totalorder %s1082_s27, %s1082_s27 }
   0x7   : > { %p1029_p5 = pneg %p1195_p3 }
   0x8   : > { %p1092_p13 = por %p1091_p12, %p1090_p11 }
   0x9   : > { %p1030_p6 = pnand %p1033_p4, %p1029_p5 }
   0xb   : > { %p1084_p8 = pneg %p1030_p6 }
   0xd   : > { %p1085_p9 = pnand %p1084_p8, %p1083_p7 }
   0xf   : > { %p1086_p10 = pneg %p1085_p9 }
  0x11   : > { %p1093_p2 = pnand %p1092_p13, %p1086_p10 }
  0x13   : > { %1096 = shalt.err (!%p1093_p2)
}
  0x14   : > { %s1139_s28 = smov [#allocation3]   ;;  %216 = sbr.rel (%p1195_p3) target bundleno = 1029 (0x405), region = 40 }
  0x15   : > { %1032 = dma.vmem_to_smem (!%p1030_p6), %s178_s25, 16, %s1139_s28, [#allocation5]  }
  0x19   : > { %1126 = dma.done.wait (%p1033_p4), [#allocation5], 16  }
  0x1a   : > { %1128 = vsyncadd (%p1033_p4), [#allocation5], 4294967280 }
  0x1b   : > { %222 = sfence }
  0x1c   : > { %p249_p0 = scmp.lt.s32.totalorder %s1187_s22, 2  ;;  %p1325_p1 = scmp.ne.s32.totalorder %s1187_s22, 0 }
  0x1e   : > { %s250_s29 = scalar_select %p249_p0, %s1187_s22, 2 }
  0x1f   : > { %267 = sbr.rel (%p1325_p1) target bundleno = 205 (0xcd), region = 48 }
  0x20   : > { %s934_s30 = sshll.u32 %s250_s29, 6  ;;  %s905_s7 = sshll.u32 %s250_s29, 2 }
  0x21   : > { %s1215_s10 = scalar_lea.vmem %s1319_s2, %s934_s30  ;;  %s1220_s13 = scalar_lea.vmem %s1320_s3, %s934_s30 }
  0x22   : > { %s1225_s16 = scalar_lea.vmem %s1321_s4, %s905_s7 }
  0x24   : > { %v301_v0 = vld [vmem:[%s1322_s5] sm:$0xff]  ;;  %v303_v1 = vld [vmem:[%s1322_s5 + $0x8] sm:$0xff]  ;;  %v305_v2 = vld [vmem:[%s1322_s5 + $0x10] sm:$0xff] }
  0x25   : > { %302 = vst [vmem:[#allocation6] sm:$0xff] %v301_v0  ;;  %304 = vst [vmem:[#allocation6 + $0x8] sm:$0xff] %v303_v1  ;;  %v307_v3 = vld [vmem:[%s1322_s5 + $0x18] sm:$0xff] }
  0x26   : > { %306 = vst [vmem:[#allocation6 + $0x10] sm:$0xff] %v305_v2  ;;  %308 = vst [vmem:[#allocation6 + $0x18] sm:$0xff] %v307_v3 }
  0x27   : > { %316 = vsyncadd [#allocation7], 512 }
  0x28   : > { %1129 = dma.done.wait [#allocation7], 512 }
  0x29   : > { %1130 = vsyncadd [#allocation7], 4294966784  ;;  %v944_v4 = vld [vmem:[%s1318_s1 + $0x8] sm:$0xff]   ;;  %vm328_vm0 = vcmask 130048   ;;  %v937_v5 = vld [vmem:[%s1318_s1] sm:$0xff]   ;;  %vm349_vm1 = vcmask 7168  }
  0x2a   : > { %v942_v6 = vunpack.c.l.bf16 %v944_v4  ;;  %v938_v7 = vunpack.c.l.bf16 %v937_v5  ;;  %v943_v8 = vunpack.c.h.bf16 %v944_v4  ;;  %v939_v9 = vunpack.c.h.bf16 %v937_v5 }
  0x2c   : > { %v335_v10 = vsel %vm328_vm0, %v942_v6, 0.0  ;;  %v329_v11 = vsel %vm328_vm0, %v938_v7, 0.0  ;;  %v338_v12 = vsel %vm328_vm0, %v943_v8, 0.0  ;;  %v332_v13 = vsel %vm328_vm0, %v939_v9, 0.0 }
  0x2d   : > { %336 = vadd.xlane.f32.xlu1 %v335_v10  ;;  %330 = vadd.xlane.f32.xlu0 %v329_v11 }
  0x31   : > { %339 = vadd.xlane.f32.xlu1 %v338_v12  ;;  %333 = vadd.xlane.f32.xlu0 %v332_v13 }
  0xb6   : > { %v337_v14 = vpop.xlane.xlu1 %336  ;;  %v331_v15 = vpop.xlane.xlu0 %330 }
  0xb7   : > { %v343_v16 = vmax.f32 %v337_v14, 1.0  ;;  %v341_v17 = vmax.f32 %v331_v15, 1.0 }
  0xb9   : > { %1052 = vrsqrt.f32 %v343_v16 }
  0xba   : > { %1054 = vrsqrt.f32 %v341_v17  ;;  %v340_v18 = vpop.xlane.xlu1 %339  ;;  %v334_v19 = vpop.xlane.xlu0 %333 }
  0xbb   : > { %v344_v20 = vmax.f32 %v340_v18, 1.0  ;;  %v342_v21 = vmax.f32 %v334_v19, 1.0 }
  0xbd   : > { %1056 = vrsqrt.f32 %v344_v20 }
  0xbe   : > { %1058 = vrsqrt.f32 %v342_v21 }
  0xc6   : > { %v1053_v22 = vpop.eup %1052 }
  0xc7   : > { %v1055_v23 = vpop.eup %1054  ;;  %352 = vst.msk [vmem:[#allocation2 + $0x10] sm:$0xff] %vm349_vm1, %v1053_v22 }
  0xc8   : > { %350 = vst.msk [vmem:[#allocation2] sm:$0xff] %vm349_vm1, %v1055_v23 }
  0xca   : > { %v1057_v24 = vpop.eup %1056 }
  0xcb   : > { %v1059_v25 = vpop.eup %1058  ;;  %353 = vst.msk [vmem:[#allocation2 + $0x18] sm:$0xff] %vm349_vm1, %v1057_v24 }
  0xcc   : > { %351 = vst.msk [vmem:[#allocation2 + $0x8] sm:$0xff] %vm349_vm1, %v1059_v25 }
  0xcd PF: > { %v1140_v28 = vmov 0   ;;  %v1141_v31 = vmov 0.0   ;;  %vm1142_vm2 = vmmov 0   ;;  %v1251_v34 = vld [vmem:[#allocation6 + $0x10] sm:$0xff]  ;;  %v354_v35 = vld [vmem:[#allocation6] sm:$0xff]  ;;  %v1253_v36 = vld [vmem:[#allocation6 + $0x18] sm:$0xff] }
  0xce   : > { %v361_v26 = vld [vmem:[#allocation2 + $0x10] sm:$0xff]  ;;  %1061 = vset.pattern.permute.xlu1 %v1140_v28  ;;  %1060 = vset.pattern.permute.xlu0 %v1140_v28  ;;  %v1255_v37 = vld [vmem:[#allocation6 + $0x8] sm:$0xff]  ;;  %v1064_v44 = vld [vmem:[%s1215_s10 + $0x38] sm:$0xff]   ;;  %vm398_vm3 = vcmask 130048   ;;  %s358_s12 = sld [smem:[#allocation3 + %s1187_s22]]  ;;  %p1035_p2 = scmp.eq.s32.totalorder %s1187_s22, 2 }
  0xcf   : > { %v359_v27 = vld [vmem:[#allocation2] sm:$0xff]  ;;  %379 = vperm.xlu1 %1061, %v361_v26   ;;  %969 = vmatprep.subr.bf16.mxu0 %v1141_v31  ;;  %v1063_v48 = vld [vmem:[%s1318_s1 + $0x8] sm:$0xff]   ;;  %v1065_v49 = vld [vmem:[%s1215_s10 + $0x30] sm:$0xff]  }
  0xd0   : > { %369 = vperm.xlu0 %1060, %v359_v27   ;;  %975 = vmatprep.subr.bf16.mxu1 %v1141_v31  ;;  %v1062_v47 = vld [vmem:[%s1318_s1] sm:$0xff]   ;;  %v1066_v50 = vld [vmem:[%s1215_s10 + $0x28] sm:$0xff]   ;;  %v1068_v52 = vld [vmem:[%s1215_s10 + $0x18] sm:$0xff]  }
  0xd1   : > { %971 = vmatprep.mubr.msk.bf16.mxu0 %vm1142_vm2, %v1141_v31  ;;  %977 = vmatprep.mubr.msk.bf16.mxu1 %vm1142_vm2, %v1141_v31  ;;  %v1067_v51 = vld [vmem:[%s1215_s10 + $0x20] sm:$0xff]   ;;  %v1069_v53 = vld [vmem:[%s1215_s10 + $0x10] sm:$0xff]   ;;  %v1070_v54 = vld [vmem:[%s1215_s10 + $0x8] sm:$0xff]  }
  0xd2   : > { %v362_v29 = vld [vmem:[#allocation2 + $0x18] sm:$0xff]  ;;  %v1071_v55 = vld [vmem:[%s1215_s10] sm:$0xff]   ;;  %v1073_v57 = vld [vmem:[%s1220_s13 + $0x30] sm:$0xff]  }
  0xd3   : > { %v360_v30 = vld [vmem:[#allocation2 + $0x8] sm:$0xff]  ;;  %384 = vperm.xlu1 %1061, %v362_v29   ;;  %v1072_v56 = vld [vmem:[%s1220_s13 + $0x38] sm:$0xff]   ;;  %v1075_v59 = vld [vmem:[%s1220_s13 + $0x20] sm:$0xff]  }
  0xd4   : > { %374 = vperm.xlu0 %1060, %v360_v30   ;;  %v1074_v58 = vld [vmem:[%s1220_s13 + $0x28] sm:$0xff]   ;;  %v1076_v60 = vld [vmem:[%s1220_s13 + $0x18] sm:$0xff]   ;;  %s496_s10 = sadd.f32 1.0, %s358_s12  ;;  %v1077_v20 = vld [vmem:[%s1220_s13 + $0x10] sm:$0xff]  }
  0xd5   : > { %v1078_v21 = vld [vmem:[%s1220_s13 + $0x8] sm:$0xff]   ;;  %v1079_v22 = vld [vmem:[%s1220_s13] sm:$0xff]   ;;  %s1143_s13 = smov [#allocation6]  }
  0xd6   : > { %v497_v61 = vstv %s496_s10  ;;  %v911_v25 = vld [vmem:[%s1225_s16] ss:$0 sm:$0xff]  ;;  %s809_s14 = sshll.u32 %s1143_s13, 4  ;;  %s810_s14 = int_to_ptr.vmem [resolvable:$true] %s809_s14 }
  0xd7   : > { %v498_v0 = vmul.f32 %v497_v61, %v354_v35  ;;  %v500_v1 = vmul.f32 %v497_v61, %v1251_v34  ;;  %v499_v6 = vmul.f32 %v497_v61, %v1255_v37  ;;  %v501_v7 = vmul.f32 %v497_v61, %v1253_v36  ;;  %s1097_s15 = scalar_lea.vmem %s810_s14, 512  ;;  %p1104_p6 = scmp.lt.s32.totalorder %s810_s14, %s810_s14 }
  0xd8   : > { %p1098_p3 = scmp.ne.s32.totalorder %s810_s14, %s1097_s15  ;;  %p1105_p7 = scmp.lt.s32.totalorder %s1097_s15, %s1097_s15 }
  0xda   : > { %p1099_p4 = pnand %p1098_p3, %p1035_p2  ;;  %p1106_p8 = por %p1105_p7, %p1104_p6 }
  0xdc   : > { %p1100_p5 = pneg %p1099_p4 }
  0xde   : > { %p1107_p9 = pnand %p1106_p8, %p1100_p5 }
 0x14a   : > { %v1247_v32 = vpop.permute.xlu1 %379 }
 0x14b   : > { %v1249_v33 = vpop.permute.xlu0 %369  ;;  %v389_v40 = vmul.f32 %v1247_v32, %v1251_v34 }
 0x14c   : > { %v387_v41 = vmul.f32 %v1249_v33, %v354_v35 }
 0x14e   : > { %v1257_v38 = vpop.permute.xlu1 %384 }
 0x14f   : > { %v1259_v39 = vpop.permute.xlu0 %374  ;;  %v390_v42 = vmul.f32 %v1257_v38, %v1253_v36 }
 0x150   : > { %v388_v43 = vmul.f32 %v1259_v39, %v1255_v37 }
 0x151   : > { %v392_v46 = vpack.c.bf16 %v390_v42, %v389_v40 }
 0x152   : > { %v391_v45 = vpack.c.bf16 %v388_v43, %v387_v41  ;;  %v920_v41 = vld [vmem:[%s1225_s16 + $0x1] ss:$0 sm:$0xff] }
 0x153   : > { %976 = vmatpush3.bf16.msra.mxu1 %v392_v46 }
 0x154   : > { %970 = vmatpush3.bf16.msra.mxu0 %v391_v45  ;;  %1001 = vmatprep.subr.bf16.mxu1 %v1072_v56 }
 0x155   : > { %981 = vmatprep.subr.bf16.mxu0 %v1064_v44 }
 0x156   : > { %978 = vmatmul.mubr.msk.bf16.vlgmr.msra.gmra.mxu1 %vm398_vm3, %v1063_v48 }
 0x157   : > { %972 = vmatmul.mubr.msk.bf16.vlgmr.msra.gmra.mxu0 %vm398_vm3, %v1062_v47  ;;  %1002 = vmatpush3.bf16.msra.mxu1 %v1072_v56 }
 0x158   : > { %982 = vmatpush3.bf16.msra.mxu0 %v1064_v44  ;;  %1003 = vmatprep.subr.bf16.mxu1 %v1073_v57 }
 0x159   : > { %983 = vmatprep.subr.bf16.mxu0 %v1065_v49 }
 0x15b   : > { %1004 = vmatpush3.bf16.msra.mxu1 %v1073_v57 }
 0x15c   : > { %984 = vmatpush3.bf16.msra.mxu0 %v1065_v49  ;;  %1005 = vmatprep.subr.bf16.mxu1 %v1074_v58 }
 0x15d   : > { %985 = vmatprep.subr.bf16.mxu0 %v1066_v50 }
 0x15f   : > { %1006 = vmatpush3.bf16.msra.mxu1 %v1074_v58 }
 0x160   : > { %986 = vmatpush3.bf16.msra.mxu0 %v1066_v50  ;;  %1007 = vmatprep.subr.bf16.mxu1 %v1075_v59 }
 0x161   : > { %987 = vmatprep.subr.bf16.mxu0 %v1067_v51 }
 0x163   : > { %1008 = vmatpush3.bf16.msra.mxu1 %v1075_v59 }
 0x164   : > { %988 = vmatpush3.bf16.msra.mxu0 %v1067_v51  ;;  %1009 = vmatprep.subr.bf16.mxu1 %v1076_v60 }
 0x165   : > { %989 = vmatprep.subr.bf16.mxu0 %v1068_v52 }
 0x167   : > { %1010 = vmatpush3.bf16.msra.mxu1 %v1076_v60 }
 0x168   : > { %990 = vmatpush3.bf16.msra.mxu0 %v1068_v52  ;;  %1011 = vmatprep.subr.bf16.mxu1 %v1077_v20 }
 0x169   : > { %991 = vmatprep.subr.bf16.mxu0 %v1069_v53 }
 0x16b   : > { %1012 = vmatpush3.bf16.msra.mxu1 %v1077_v20 }
 0x16c   : > { %992 = vmatpush3.bf16.msra.mxu0 %v1069_v53  ;;  %1013 = vmatprep.subr.bf16.mxu1 %v1078_v21 }
 0x16d   : > { %993 = vmatprep.subr.bf16.mxu0 %v1070_v54 }
 0x16f   : > { %1014 = vmatpush3.bf16.msra.mxu1 %v1078_v21 }
 0x170   : > { %994 = vmatpush3.bf16.msra.mxu0 %v1070_v54  ;;  %1015 = vmatprep.subr.bf16.mxu1 %v1079_v22 }
 0x171   : > { %995 = vmatprep.subr.bf16.mxu0 %v1071_v55 }
 0x173   : > { %1016 = vmatpush3.bf16.msra.mxu1 %v1079_v22 }
 0x174   : > { %996 = vmatpush3.bf16.msra.mxu0 %v1071_v55 }
 0x216   : > { %v485_v63 = vpop.f32.mrf.mxu1 }
 0x217   : > { %v436_v62 = vpop.f32.mrf.mxu0  ;;  %v494_v5 = vmul.f32 %v485_v63, %v1247_v32 }
 0x218   : > { %v979_v3 = vpop.f32.mrf.mxu1  ;;  %v492_v4 = vmul.f32 %v436_v62, %v1249_v33 }
 0x219   : > { %v973_v2 = vpop.f32.mrf.mxu0  ;;  %v504_v15 = vadd.f32 %v500_v1, %v494_v5 }
 0x21a   : > { %v488_v9 = vpop.f32.mrf.mxu1  ;;  %v502_v14 = vadd.f32 %v498_v0, %v492_v4 }
 0x21b   : > { %v439_v8 = vpop.f32.mrf.mxu0  ;;  %v495_v11 = vmul.f32 %v488_v9, %v1257_v38 }
 0x21c   : > { %v493_v10 = vmul.f32 %v439_v8, %v1259_v39  ;;  %v980_v13 = vpop.f32.mrf.mxu1 }
 0x21d   : > { %v974_v12 = vpop.f32.mrf.mxu0  ;;  %v505_v17 = vadd.f32 %v501_v7, %v495_v11 }
 0x21e   : > { %v503_v16 = vadd.f32 %v499_v6, %v493_v10  ;;  %v783_v12 = vlaneseq }
 0x21f   : > { %v511_v18 = vpack.c.bf16 %v505_v17, %v504_v15 }
 0x220   : > { %v510_v19 = vpack.c.bf16 %v503_v16, %v502_v14  ;;  %v784_v13 = vshrl.u32 %v783_v12, 7  ;;  %v508_v14 = vld [vmem:[%s1225_s16 + $0x2] sm:$0x1] }
 0x222   : > { %997 = vmatprep.mubr.bf16.mxu0 %v510_v19  ;;  %v785_v15 = vsub.s32 0, %v784_v13  ;;  %v929_v19 = vld [vmem:[%s1225_s16 + $0x3] ss:$0 sm:$0xff] }
 0x223   : > { %998 = vmatmul.mubr.bf16.vlgmr.msra.gmra.mxu0 %v511_v18 }
 0x2e3   : > { %v999_v23 = vpop.f32.mrf.mxu0 }
 0x2e4   : > { %v623_v29 = vadd.f32 %v999_v23, %v911_v25 }
 0x2e5   : > { %v614_v24 = vpop.f32.mrf.mxu0 }
 0x2e6   : > { %v615_v27 = vadd.f32 %v911_v25, %v614_v24  ;;  %v631_v35 = vmax.f32 %v623_v29, 0.0 }
 0x2e7   : > { %v1000_v26 = vpop.f32.mrf.mxu0 }
 0x2e8   : > { %v626_v28 = vadd.f32 %v1000_v26, %v911_v25  ;;  %v629_v33 = vmax.f32 %v615_v27, 0.0 }
 0x2e9   : > { %v617_v30 = vpop.f32.mrf.mxu0 }
 0x2ea   : > { %v618_v31 = vadd.f32 %v911_v25, %v617_v30  ;;  %v632_v32 = vmax.f32 %v626_v28, 0.0 }
 0x2ec   : > { %v630_v34 = vmax.f32 %v618_v31, 0.0  ;;  %v634_v37 = vpack.c.bf16 %v632_v32, %v631_v35 }
 0x2ee   : > { %v633_v36 = vpack.c.bf16 %v630_v34, %v629_v33 }
 0x2f0   : > { %1017 = vmatprep.mubr.bf16.mxu1 %v633_v36 }
 0x2f1   : > { %1018 = vmatmul.mubr.bf16.vlgmr.msra.gmra.mxu1 %v634_v37 }
 0x3b1   : > { %v1019_v38 = vpop.f32.mrf.mxu1 }
 0x3b2   : > { %v746_v45 = vadd.f32 %v1019_v38, %v920_v41 }
 0x3b3   : > { %v737_v39 = vpop.f32.mrf.mxu1 }
 0x3b4   : > { %v738_v43 = vadd.f32 %v920_v41, %v737_v39 }
 0x3b5   : > { %v1020_v40 = vpop.f32.mrf.mxu1 }
 0x3b6   : > { %v749_v47 = vadd.f32 %v1020_v40, %v920_v41 }
 0x3b7   : > { %v740_v42 = vpop.f32.mrf.mxu1 }
 0x3b8   : > { %v741_v44 = vadd.f32 %v920_v41, %v740_v42 }
 0x3ba   : > { %v752_v46 = vadd.f32 %v741_v44, %v738_v43 }
 0x3bc   : > { %v753_v48 = vadd.f32 %v752_v46, %v746_v45 }
 0x3be   : > { %v754_v49 = vadd.f32 %v753_v48, %v749_v47 }
 0x3c0   : > { %v755_v50 = vrot.slane %v754_v49, 4 }
 0x3c2   : > { %v756_v51 = vadd.f32 %v755_v50, %v754_v49 }
 0x3c4   : > { %v757_v52 = vrot.slane %v756_v51, 2 }
 0x3c6   : > { %v758_v53 = vadd.f32 %v757_v52, %v756_v51 }
 0x3c8   : > { %v759_v54 = vrot.slane %v758_v53, 1 }
 0x3ca   : > { %v760_v55 = vadd.f32 %v759_v54, %v758_v53 }
 0x3cc   : > { %v761_v56 = vmul.f32 0.03125, %v760_v55 }
 0x3ce   : > { %v762_v57 = vsub.f32 %v738_v43, %v761_v56  ;;  %v763_v58 = vsub.f32 %v741_v44, %v761_v56  ;;  %v764_v59 = vsub.f32 %v746_v45, %v761_v56  ;;  %v765_v60 = vsub.f32 %v749_v47, %v761_v56 }
 0x3d0   : > { %v766_v61 = vmul.f32 %v762_v57, %v762_v57  ;;  %v767_v62 = vmul.f32 %v763_v58, %v763_v58  ;;  %v768_v63 = vmul.f32 %v764_v59, %v764_v59  ;;  %v769_v1 = vmul.f32 %v765_v60, %v765_v60 }
 0x3d2   : > { %v770_v0 = vadd.f32 %v767_v62, %v766_v61 }
 0x3d4   : > { %v771_v2 = vadd.f32 %v770_v0, %v768_v63 }
 0x3d6   : > { %v772_v3 = vadd.f32 %v771_v2, %v769_v1 }
 0x3d8   : > { %v773_v4 = vrot.slane %v772_v3, 4 }
 0x3da   : > { %v774_v5 = vadd.f32 %v773_v4, %v772_v3 }
 0x3dc   : > { %v775_v6 = vrot.slane %v774_v5, 2 }
 0x3de   : > { %v776_v7 = vadd.f32 %v775_v6, %v774_v5 }
 0x3e0   : > { %v777_v8 = vrot.slane %v776_v7, 1 }
 0x3e2   : > { %v778_v9 = vadd.f32 %v777_v8, %v776_v7 }
 0x3e4   : > { %v779_v10 = vmul.f32 0.03125, %v778_v9 }
 0x3e6   : > { %v780_v11 = vadd.f32 1e-05, %v779_v10 }
 0x3e8   : > { %1080 = vrsqrt.f32 %v780_v11 }
 0x3f5   : > { %v1081_v16 = vpop.eup %1080 }
 0x3f6   : > { %v782_v17 = vmul.f32 %v1081_v16, %v508_v14 }
 0x3f8   : > { %v786_v18 = vrot.slane %v782_v17, %v785_v15 }
 0x3fa   : > { %v787_v20 = vmul.f32 %v786_v18, %v762_v57  ;;  %v788_v21 = vmul.f32 %v786_v18, %v763_v58  ;;  %v789_v22 = vmul.f32 %v786_v18, %v764_v59  ;;  %v790_v23 = vmul.f32 %v786_v18, %v765_v60 }
 0x3fc   : > { %v795_v24 = vadd.f32 %v929_v19, %v787_v20  ;;  %v796_v25 = vadd.f32 %v929_v19, %v788_v21  ;;  %v797_v26 = vadd.f32 %v929_v19, %v789_v22  ;;  %v798_v27 = vadd.f32 %v929_v19, %v790_v23 }
 0x3fe   : > { %800 = vst [vmem:[#allocation6 + $0x8] sm:$0xff] %v796_v25  ;;  %799 = vst [vmem:[#allocation6] sm:$0xff] %v795_v24 }
 0x3ff   : > { %801 = vst [vmem:[#allocation6 + $0x10] sm:$0xff] %v797_v26  ;;  %802 = vst [vmem:[#allocation6 + $0x18] sm:$0xff] %v798_v27 }
 0x400   : > { %1110 = shalt.err (!%p1107_p9)
}
 0x401   : > { %s1144_s16 = smov 128   ;;  %s1145_s17 = smov 8  }
 0x402   : > { %1026 = dma.vmem_to_hbm [thread:$0]  (%p1035_p2), %s810_s14, 512, %s1323_s6, [#allocation4], %s1144_s16, %s1144_s16, %s1145_s17  }
 0x403   : > { %1132 = dma.done.wait (%p1035_p2), [#allocation4], 512  }
 0x404   : > { %1134 = vsyncadd (%p1035_p2), [#allocation4], 4294966784 }
 0x405 PF: > { %s18_s21 = sadd.s32 1, %s1137_s21  }
 0x406   : > { %p15_p10 = scmp.ge.s32.totalorder %s18_s21, 5  }
 0x408   :  { %17 = sbr.rel (!%p15_p10) target bundleno = 2 (0x2), region = 125 }
 0x40d   :  { %825 = vsyncpa [#allocation4], 1 }
 0x40e   :  { %827 = vsyncpa [#allocation4 + $0x1], 1 }
 0x40f   :  { %828 = vsyncpa [#allocation5], 1 }
 0x410   :  { %830 = vsyncpa [#allocation5 + $0x1], 1 }

</bundles_post_ra>
